<compile_context>
chip_gen: v7x
topology: tpu7x:2x2x1
jax: 0.10.0
libtpu: 0.0.40
codegen_flags: <defaults>
</compile_context>

<pallas_src>
import math

import jax
import jax.numpy as jnp
from jax.experimental import pallas as pl
from jax.experimental.pallas import tpu as pltpu


def _round_up(x, m):
    return -(-x // m) * m


# ---------------------------------------------------------------------------
# Fused kernel: GaussianFourierProjection -> Linear(E,E) -> swish -> Dense(E,C)
# ---------------------------------------------------------------------------
def _fused_embed_dense_kernel(t_ref, w2pi_ref, ws_ref, wc_ref, b_ref,
                              wd_ref, bd_ref, embed_ref, cond_ref):
    # t_ref: (tb,1) f32     w2pi_ref: (1,H) f32 (2*pi pre-folded)
    # ws_ref/wc_ref: (H,E) bf16 (sin/cos halves of the embed weight, in x out)
    # b_ref: (1,E) f32      wd_ref: (E,Cp) bf16   bd_ref: (1,Cp) f32
    # embed_ref: (tb,E) f32 cond_ref: (tb,Cp) f32
    xp = t_ref[...] * w2pi_ref[...]                          # (tb, H)
    s = jnp.sin(xp).astype(jnp.bfloat16)
    c = jnp.cos(xp).astype(jnp.bfloat16)
    # Two half-K dots instead of concatenate + one full dot.
    z = (jnp.dot(s, ws_ref[...], preferred_element_type=jnp.float32)
         + jnp.dot(c, wc_ref[...], preferred_element_type=jnp.float32)
         + b_ref[...])
    e = z * jax.nn.sigmoid(z)                                # swish, f32
    embed_ref[...] = e                                       # lane-dense (E = 2H)
    cond_ref[...] = (jnp.dot(e.astype(jnp.bfloat16), wd_ref[...],
                             preferred_element_type=jnp.float32)
                     + bd_ref[...])                          # lane-dense (Cp)


def time_embed_and_dense(t, w_fourier, w_lin, b_lin, w_dense, b_dense,
                         *, tb_max=256):
    """Fused time-conditioning path.

    t: (B,), w_fourier: (H,), w_lin: (E,E) [torch out x in], b_lin: (E,),
    w_dense: (C,E) [torch out x in], b_dense: (C,).
    Returns (embed (B,E), cond (B,C,1,1)).
    """
    B = t.shape[0]
    H = w_fourier.shape[0]
    E = 2 * H
    C = w_dense.shape[0]
    Cp = _round_up(C, 128)                                   # lane-dense cond

    # Frozen-parameter prep: fold 2*pi, transpose to in x out, split the embed
    # weight into sin/cos halves, bf16 weights (f32 biases / accumulation).
    w2pi = (w_fourier.astype(jnp.float32) * (2.0 * math.pi)).reshape(1, H)
    wt = w_lin.astype(jnp.float32).T                         # (E, E), in x out
    ws = wt[:H].astype(jnp.bfloat16)                         # sin half  (H, E)
    wc = wt[H:].astype(jnp.bfloat16)                         # cos half  (H, E)
    b2 = b_lin.astype(jnp.float32).reshape(1, E)
    wd = jnp.zeros((E, Cp), jnp.bfloat16).at[:, :C].set(
        w_dense.astype(jnp.float32).T.astype(jnp.bfloat16))
    bd = jnp.zeros((1, Cp), jnp.float32).at[:, :C].set(b_dense.astype(jnp.float32))

    # Pad batch to a sublane multiple; pick tb so the grid has >=2 programs
    # once the batch is big enough (v7x megacore), capped at 256 (MXU M-dim).
    Bp = _round_up(B, 8)
    tp = t.astype(jnp.float32)
    if Bp != B:
        tp = jnp.pad(tp, (0, Bp - B))
    tp = tp.reshape(Bp, 1)
    tb = min(tb_max, max(8, _round_up(Bp // 2, 8)))
    ngrid = pl.cdiv(Bp, tb)

    cost = pl.CostEstimate(
        flops=2 * Bp * E * E + 2 * Bp * E * Cp,
        transcendentals=Bp * (2 * H + E),                    # sin + cos + sigmoid exp
        bytes_accessed=(4 * Bp + 4 * H                       # t, fourier weight
                        + 2 * E * E + 2 * E * Cp             # bf16 matmul weights
                        + 4 * E + 4 * Cp                     # biases
                        + 4 * Bp * E + 4 * Bp * Cp),         # outputs
    )

    embed_p, cond_p = pl.pallas_call(
        _fused_embed_dense_kernel,
        out_shape=(jax.ShapeDtypeStruct((Bp, E), jnp.float32),
                   jax.ShapeDtypeStruct((Bp, Cp), jnp.float32)),
        grid_spec=pltpu.PrefetchScalarGridSpec(
            num_scalar_prefetch=0,
            grid=(ngrid,),
            in_specs=[
                pl.BlockSpec((tb, 1), lambda i: (i, 0)),
                pl.BlockSpec((1, H), lambda i: (0, 0)),
                pl.BlockSpec((H, E), lambda i: (0, 0)),
                pl.BlockSpec((H, E), lambda i: (0, 0)),
                pl.BlockSpec((1, E), lambda i: (0, 0)),
                pl.BlockSpec((E, Cp), lambda i: (0, 0)),
                pl.BlockSpec((1, Cp), lambda i: (0, 0)),
            ],
            out_specs=[
                pl.BlockSpec((tb, E), lambda i: (i, 0)),
                pl.BlockSpec((tb, Cp), lambda i: (i, 0)),
            ],
        ),
        compiler_params=pltpu.CompilerParams(
            dimension_semantics=("parallel",)),
        cost_estimate=cost,
    )(tp, w2pi, ws, wc, b2, wd, bd)

    embed = embed_p[:B]
    cond = cond_p[:B, :C].reshape(B, C, 1, 1)
    return embed, cond


# ---------------------------------------------------------------------------
# Standalone Dense (for the other UNet conditioning projections): lane-dense
# output, bf16 weight, batch-gridded.
# ---------------------------------------------------------------------------
def _dense_kernel(e_ref, wd_ref, bd_ref, o_ref):
    o_ref[...] = (jnp.dot(e_ref[...].astype(jnp.bfloat16), wd_ref[...],
                          preferred_element_type=jnp.float32)
                  + bd_ref[...])


def dense(embed, w_lin, b_lin, *, tb_max=256):
    """embed: (B,E), w_lin: (C,E) [torch out x in], b_lin: (C,) -> (B,C,1,1)."""
    B, E = embed.shape
    C = w_lin.shape[0]
    Cp = _round_up(C, 128)
    wd = jnp.zeros((E, Cp), jnp.bfloat16).at[:, :C].set(
        w_lin.astype(jnp.float32).T.astype(jnp.bfloat16))
    bd = jnp.zeros((1, Cp), jnp.float32).at[:, :C].set(b_lin.astype(jnp.float32))

    Bp = _round_up(B, 8)
    e = embed.astype(jnp.float32)
    if Bp != B:
        e = jnp.pad(e, ((0, Bp - B), (0, 0)))
    tb = min(tb_max, max(8, _round_up(Bp // 2, 8)))
    ngrid = pl.cdiv(Bp, tb)

    cost = pl.CostEstimate(
        flops=2 * Bp * E * Cp,
        transcendentals=0,
        bytes_accessed=4 * Bp * E + 2 * E * Cp + 4 * Cp + 4 * Bp * Cp,
    )
    out = pl.pallas_call(
        _dense_kernel,
        out_shape=jax.ShapeDtypeStruct((Bp, Cp), jnp.float32),
        grid_spec=pltpu.PrefetchScalarGridSpec(
            num_scalar_prefetch=0,
            grid=(ngrid,),
            in_specs=[
                pl.BlockSpec((tb, E), lambda i: (i, 0)),
                pl.BlockSpec((E, Cp), lambda i: (0, 0)),
                pl.BlockSpec((1, Cp), lambda i: (0, 0)),
            ],
            out_specs=pl.BlockSpec((tb, Cp), lambda i: (i, 0)),
        ),
        compiler_params=pltpu.CompilerParams(
            dimension_semantics=("parallel",)),
        cost_estimate=cost,
    )(e, wd, bd)
    # The [..., None, None] broadcast is layout plumbing -> wrapper reshape.
    return out[:B, :C].reshape(B, C, 1, 1)


# ---------------------------------------------------------------------------
# Pure-JAX references (f32, exact PyTorch semantics)
# ---------------------------------------------------------------------------
def _ref_time_embed(t, w_fourier, w_lin, b_lin):
    x_proj = t[:, None] * w_fourier[None, :] * 2.0 * math.pi
    feat = jnp.concatenate([jnp.sin(x_proj), jnp.cos(x_proj)], axis=-1)
    z = feat @ w_lin.T + b_lin[None, :]
    return z * jax.nn.sigmoid(z)


def _ref_dense(embed, w_lin, b_lin):
    return (embed @ w_lin.T + b_lin[None, :])[:, :, None, None]


if __name__ == "__main__":
    key = jax.random.PRNGKey(0)
    k_wf, k_wl, k_bl, k_wd, k_bd, k_w1, k_b1, k_t = jax.random.split(key, 8)

    batch = 4
    embed_dim = 256          # module default; H = 128 (lane-dense)
    scale = 30.0
    c_in = 64                # dense_in: embed_dim -> 64
    c_d1 = 128               # dense_d1: embed_dim -> 128

    # Frozen GaussianFourierProjection parameter: randn(embed_dim//2) * scale
    W_fourier = jax.random.normal(k_wf, (embed_dim // 2,), jnp.float32) * scale
    # embed Linear(embed_dim, embed_dim) params (PyTorch layout: out x in)
    W_lin = jax.random.normal(k_wl, (embed_dim, embed_dim), jnp.float32) * 0.05
    b_lin = jax.random.normal(k_bl, (embed_dim,), jnp.float32) * 0.05
    # dense_in Linear(embed_dim, 64) params
    W_dense = jax.random.normal(k_wd, (c_in, embed_dim), jnp.float32) * 0.05
    b_dense = jax.random.normal(k_bd, (c_in,), jnp.float32) * 0.05
    # dense_d1 Linear(embed_dim, 128) params (checks the standalone helper)
    W_d1 = jax.random.normal(k_w1, (c_d1, embed_dim), jnp.float32) * 0.05
    b_d1 = jax.random.normal(k_b1, (c_d1,), jnp.float32) * 0.05
    # Timesteps t, shape (B,)
    t = jax.random.uniform(k_t, (batch,), jnp.float32)

    embed, cond_in = time_embed_and_dense(t, W_fourier, W_lin, b_lin,
                                          W_dense, b_dense)
    embed = jax.block_until_ready(embed)
    cond_in = jax.block_until_ready(cond_in)
    cond_d1 = jax.block_until_ready(dense(embed, W_d1, b_d1))

    embed_ref = _ref_time_embed(t, W_fourier, W_lin, b_lin)
    cond_in_ref = _ref_dense(embed_ref, W_dense, b_dense)
    cond_d1_ref = _ref_dense(embed_ref, W_d1, b_d1)

    assert embed.shape == (batch, embed_dim), embed.shape
    assert cond_in.shape == (batch, c_in, 1, 1), cond_in.shape
    assert cond_d1.shape == (batch, c_d1, 1, 1), cond_d1.shape
    # bf16 matmul weights (f32 accumulation) -> loosened tolerance vs f32 ref.
    assert jnp.allclose(embed, embed_ref, atol=1e-2, rtol=1e-2), "embed mismatch"
    assert jnp.allclose(cond_in, cond_in_ref, atol=1e-2, rtol=1e-2), "cond_in mismatch"
    assert jnp.allclose(cond_d1, cond_d1_ref, atol=1e-2, rtol=1e-2), "cond_d1 mismatch"

    print("KERNEL_OK")
</pallas_src>

<mosaic_0001>
module attributes {stable_mosaic.version = 11 : i64} {
  func.func @_fused_embed_dense_kernel(%arg0: i32, %arg1: memref<8x1xf32, #tpu.memory_space<vmem>>, %arg2: memref<1x128xf32, #tpu.memory_space<vmem>>, %arg3: memref<128x256xbf16, #tpu.memory_space<vmem>>, %arg4: memref<128x256xbf16, #tpu.memory_space<vmem>>, %arg5: memref<1x256xf32, #tpu.memory_space<vmem>>, %arg6: memref<256x128xbf16, #tpu.memory_space<vmem>>, %arg7: memref<1x128xf32, #tpu.memory_space<vmem>>, %arg8: memref<8x256xf32, #tpu.memory_space<vmem>>, %arg9: memref<8x128xf32, #tpu.memory_space<vmem>>) attributes {dimension_semantics = [#tpu.dimension_semantics<parallel>], iteration_bounds = array<i64: 1>, scalar_prefetch = 0 : i64, scratch_operands = 0 : i64, tpu.core_type = #tpu.core_type<tc>, window_params = [{transform_indices = @transform_0, window_bounds = array<i64: 8, 1>}, {pipeline_mode = #tpu.pipeline_mode<synchronous>, transform_indices = @transform_1, window_bounds = array<i64: 1, 128>}, {pipeline_mode = #tpu.pipeline_mode<synchronous>, transform_indices = @transform_2, window_bounds = array<i64: 128, 256>}, {pipeline_mode = #tpu.pipeline_mode<synchronous>, transform_indices = @transform_3, window_bounds = array<i64: 128, 256>}, {pipeline_mode = #tpu.pipeline_mode<synchronous>, transform_indices = @transform_4, window_bounds = array<i64: 1, 256>}, {pipeline_mode = #tpu.pipeline_mode<synchronous>, transform_indices = @transform_5, window_bounds = array<i64: 256, 128>}, {pipeline_mode = #tpu.pipeline_mode<synchronous>, transform_indices = @transform_6, window_bounds = array<i64: 1, 128>}, {transform_indices = @transform_7, window_bounds = array<i64: 8, 256>}, {transform_indices = @transform_8, window_bounds = array<i64: 8, 128>}]} {
    %c0 = arith.constant 0 : index
    %c0_0 = arith.constant 0 : index
    %0 = vector.load %arg1[%c0, %c0_0] : memref<8x1xf32, #tpu.memory_space<vmem>>, vector<8x1xf32>
    %c0_1 = arith.constant 0 : index
    %c0_2 = arith.constant 0 : index
    %1 = vector.load %arg2[%c0_1, %c0_2] : memref<1x128xf32, #tpu.memory_space<vmem>>, vector<1x128xf32>
    %2 = vector.broadcast %0 : vector<8x1xf32> to vector<8x128xf32>
    %3 = vector.broadcast %1 : vector<1x128xf32> to vector<8x128xf32>
    %4 = arith.mulf %2, %3 : vector<8x128xf32>
    %5 = math.sin %4 : vector<8x128xf32>
    %6 = arith.truncf %5 : vector<8x128xf32> to vector<8x128xbf16>
    %7 = math.cos %4 : vector<8x128xf32>
    %8 = arith.truncf %7 : vector<8x128xf32> to vector<8x128xbf16>
    %c0_3 = arith.constant 0 : index
    %c0_4 = arith.constant 0 : index
    %9 = vector.load %arg3[%c0_3, %c0_4] : memref<128x256xbf16, #tpu.memory_space<vmem>>, vector<128x256xbf16>
    %cst = arith.constant dense<0.000000e+00> : vector<8x256xf32>
    %10 = tpu.matmul %6, %9, %cst {dimension_numbers = #tpu.dot_dimension_numbers<[1], [0], [0], [1], [0, 0, 1, 1], [], []>} : vector<8x128xbf16>, vector<128x256xbf16>, vector<8x256xf32> -> vector<8x256xf32>
    %c0_5 = arith.constant 0 : index
    %c0_6 = arith.constant 0 : index
    %11 = vector.load %arg4[%c0_5, %c0_6] : memref<128x256xbf16, #tpu.memory_space<vmem>>, vector<128x256xbf16>
    %cst_7 = arith.constant dense<0.000000e+00> : vector<8x256xf32>
    %12 = tpu.matmul %8, %11, %cst_7 {dimension_numbers = #tpu.dot_dimension_numbers<[1], [0], [0], [1], [0, 0, 1, 1], [], []>} : vector<8x128xbf16>, vector<128x256xbf16>, vector<8x256xf32> -> vector<8x256xf32>
    %13 = arith.addf %10, %12 : vector<8x256xf32>
    %c0_8 = arith.constant 0 : index
    %c0_9 = arith.constant 0 : index
    %14 = vector.load %arg5[%c0_8, %c0_9] : memref<1x256xf32, #tpu.memory_space<vmem>>, vector<1x256xf32>
    %15 = vector.broadcast %14 : vector<1x256xf32> to vector<8x256xf32>
    %16 = arith.addf %13, %15 : vector<8x256xf32>
    %17 = arith.negf %16 : vector<8x256xf32>
    %18 = math.exp %17 : vector<8x256xf32>
    %cst_10 = arith.constant 1.000000e+00 : f32
    %19 = vector.broadcast %cst_10 : f32 to vector<8x256xf32>
    %20 = arith.addf %19, %18 : vector<8x256xf32>
    %21 = arith.divf %19, %20 : vector<8x256xf32>
    %22 = arith.mulf %16, %21 : vector<8x256xf32>
    %c0_11 = arith.constant 0 : index
    %c0_12 = arith.constant 0 : index
    %23 = vector.load %arg8[%c0_11, %c0_12] : memref<8x256xf32, #tpu.memory_space<vmem>>, vector<8x256xf32>
    tpu.vector_store %arg8[%c0_11, %c0_12], %22 {strides = array<i32>} : memref<8x256xf32, #tpu.memory_space<vmem>>, vector<8x256xf32>,
    %24 = arith.truncf %22 : vector<8x256xf32> to vector<8x256xbf16>
    %c0_13 = arith.constant 0 : index
    %c0_14 = arith.constant 0 : index
    %25 = vector.load %arg6[%c0_13, %c0_14] : memref<256x128xbf16, #tpu.memory_space<vmem>>, vector<256x128xbf16>
    %cst_15 = arith.constant dense<0.000000e+00> : vector<8x128xf32>
    %26 = tpu.matmul %24, %25, %cst_15 {dimension_numbers = #tpu.dot_dimension_numbers<[1], [0], [0], [1], [0, 0, 1, 1], [], []>} : vector<8x256xbf16>, vector<256x128xbf16>, vector<8x128xf32> -> vector<8x128xf32>
    %c0_16 = arith.constant 0 : index
    %c0_17 = arith.constant 0 : index
    %27 = vector.load %arg7[%c0_16, %c0_17] : memref<1x128xf32, #tpu.memory_space<vmem>>, vector<1x128xf32>
    %28 = vector.broadcast %27 : vector<1x128xf32> to vector<8x128xf32>
    %29 = arith.addf %26, %28 : vector<8x128xf32>
    %c0_18 = arith.constant 0 : index
    %c0_19 = arith.constant 0 : index
    %30 = vector.load %arg9[%c0_18, %c0_19] : memref<8x128xf32, #tpu.memory_space<vmem>>, vector<8x128xf32>
    tpu.vector_store %arg9[%c0_18, %c0_19], %29 {strides = array<i32>} : memref<8x128xf32, #tpu.memory_space<vmem>>, vector<8x128xf32>,
    return
  }
  func.func @transform_0(%arg0: i32) -> (i32, i32) {
    %c0_i32 = arith.constant 0 : i32
    %c0_i32_0 = arith.constant 0 : i32
    return %arg0, %c0_i32 : i32, i32
  }
  func.func @transform_1(%arg0: i32) -> (i32, i32) {
    %c0_i32 = arith.constant 0 : i32
    %c0_i32_0 = arith.constant 0 : i32
    %c0_i32_1 = arith.constant 0 : i32
    return %c0_i32, %c0_i32_0 : i32, i32
  }
  func.func @transform_2(%arg0: i32) -> (i32, i32) {
    %c0_i32 = arith.constant 0 : i32
    %c0_i32_0 = arith.constant 0 : i32
    %c0_i32_1 = arith.constant 0 : i32
    return %c0_i32, %c0_i32_0 : i32, i32
  }
  func.func @transform_3(%arg0: i32) -> (i32, i32) {
    %c0_i32 = arith.constant 0 : i32
    %c0_i32_0 = arith.constant 0 : i32
    %c0_i32_1 = arith.constant 0 : i32
    return %c0_i32, %c0_i32_0 : i32, i32
  }
  func.func @transform_4(%arg0: i32) -> (i32, i32) {
    %c0_i32 = arith.constant 0 : i32
    %c0_i32_0 = arith.constant 0 : i32
    %c0_i32_1 = arith.constant 0 : i32
    return %c0_i32, %c0_i32_0 : i32, i32
  }
  func.func @transform_5(%arg0: i32) -> (i32, i32) {
    %c0_i32 = arith.constant 0 : i32
    %c0_i32_0 = arith.constant 0 : i32
    %c0_i32_1 = arith.constant 0 : i32
    return %c0_i32, %c0_i32_0 : i32, i32
  }
  func.func @transform_6(%arg0: i32) -> (i32, i32) {
    %c0_i32 = arith.constant 0 : i32
    %c0_i32_0 = arith.constant 0 : i32
    %c0_i32_1 = arith.constant 0 : i32
    return %c0_i32, %c0_i32_0 : i32, i32
  }
  func.func @transform_7(%arg0: i32) -> (i32, i32) {
    %c0_i32 = arith.constant 0 : i32
    %c0_i32_0 = arith.constant 0 : i32
    return %arg0, %c0_i32 : i32, i32
  }
  func.func @transform_8(%arg0: i32) -> (i32, i32) {
    %c0_i32 = arith.constant 0 : i32
    %c0_i32_0 = arith.constant 0 : i32
    return %arg0, %c0_i32 : i32, i32
  }
}

</mosaic_0001>

<bundles_post_ra>
// kernel: tpu_custom_call.1
= control target key start
LH: loop header
LB: loop body
LE: loop exit
PB: predicated region body
PF: predicated region fallthrough
CT: control target
= control target key end

     0   :  { %14 = vsyncpa [#allocation3], 0  ;;  %s1265_s0 = inlined_call_operand.vmem [shape: f32[8,1], index: 0, kind: input, shape index: {}]   ;;  %s1266_s1 = inlined_call_operand.vmem [shape: f32[1,128], index: 1, kind: input, shape index: {}]   ;;  %s1267_s2 = inlined_call_operand.hbm [shape: bf16[128,256], index: 2, kind: input, shape index: {}]   ;;  %s1268_s3 = inlined_call_operand.hbm [shape: bf16[128,256], index: 3, kind: input, shape index: {}]   ;;  %s1269_s4 = inlined_call_operand.vmem [shape: f32[1,256], index: 4, kind: input, shape index: {}]   ;;  %s1270_s5 = inlined_call_operand.hbm [shape: bf16[256,128], index: 5, kind: input, shape index: {}]   ;;  %s1271_s6 = inlined_call_operand.vmem [shape: f32[1,128], index: 6, kind: input, shape index: {}]   ;;  %s1272_s7 = inlined_call_operand.hbm [shape: f32[8,256], index: 7, kind: output, shape index: {0}]   ;;  %s1273_s8 = inlined_call_operand.hbm [shape: f32[8,128], index: 8, kind: output, shape index: {1}]  }
   0x1   :  { %15 = vsyncpa [#allocation6], 0 }
   0x2   :  { %16 = vsyncpa [#allocation4], 0 }
   0x3   :  { %17 = vsyncpa [#allocation10], 0  ;;  %s1104_s27 = smov [#allocation5]   ;;  %s1105_s29 = smov [#allocation2]  }
   0x4   :  { %s39_s28 = sshll.u32 %s1104_s27, 4  ;;  %s27_s30 = sshll.u32 %s1105_s29, 4  ;;  %s40_s28 = int_to_ptr.vmem [resolvable:$true] %s39_s28  ;;  %s1165_s30 = int_to_ptr.vmem [resolvable:$true] %s27_s30 }
   0x5   :  { %s986_s11 = scalar_lea.hbm %s1268_s3, 2048 }
   0x6   :  { %p987_p0 = scmp.ne.s32.totalorder %s1268_s3, %s986_s11  ;;  %p990_p1 = scmp.lt.u32.totalorder %s986_s11, %s1268_s3 }
   0x8   :  { %p992_p2 = pnand %p990_p1, %p987_p0 }
   0xa   :  { %995 = shalt.err (!%p992_p2)
}
   0xb   :  { %s996_s16 = scalar_lea.vmem %s40_s28, 2048  ;;  %p1001_p4 = scmp.lt.s32.totalorder %s40_s28, %s40_s28 }
   0xc   :  { %p997_p3 = scmp.ne.s32.totalorder %s40_s28, %s996_s16  ;;  %p1002_p5 = scmp.lt.s32.totalorder %s996_s16, %s996_s16 }
   0xe   :  { %p1003_p6 = por %p1002_p5, %p1001_p4 }
  0x10   :  { %p1004_p7 = pnand %p1003_p6, %p997_p3 }
  0x12   :  { %1007 = shalt.err (!%p1004_p7)
}
  0x13   :  { %s1106_s17 = smov 128   ;;  %s1107_s18 = smov 8  }
  0x14   :  { %45 = dma.hbm_to_vmem [thread:$0]  %s1268_s3, 2048, %s40_s28, [#allocation6], %s1106_s17, %s1106_s17, %s1107_s18  }
  0x15   :  { %s1008_s23 = scalar_lea.hbm %s1267_s2, 2048 }
  0x16   :  { %p1009_p8 = scmp.ne.s32.totalorder %s1267_s2, %s1008_s23  ;;  %p1012_p9 = scmp.lt.u32.totalorder %s1008_s23, %s1267_s2 }
  0x18   :  { %p1014_p10 = pnand %p1012_p9, %p1009_p8 }
  0x1a   :  { %1017 = shalt.err (!%p1014_p10)
}
  0x1b   :  { %s1018_s29 = scalar_lea.vmem %s1165_s30, 2048  ;;  %p1023_p12 = scmp.lt.s32.totalorder %s1165_s30, %s1165_s30 }
  0x1c   :  { %p1019_p11 = scmp.ne.s32.totalorder %s1165_s30, %s1018_s29  ;;  %p1024_p13 = scmp.lt.s32.totalorder %s1018_s29, %s1018_s29 }
  0x1e   :  { %p1025_p0 = por %p1024_p13, %p1023_p12 }
  0x20   :  { %p1026_p1 = pnand %p1025_p0, %p1019_p11 }
  0x22   :  { %1029 = shalt.err (!%p1026_p1)
}
  0x23   :  { %33 = dma.hbm_to_vmem [thread:$0]  %s1267_s2, 2048, %s1165_s30, [#allocation3], %s1106_s17, %s1106_s17, %s1107_s18  }
  0x24   :  { %s1108_s9 = smov [#allocation7]   ;;  %s1030_s13 = scalar_lea.hbm %s1270_s5, 2048 }
  0x25   :  { %s53_s10 = sshll.u32 %s1108_s9, 4  ;;  %p1031_p2 = scmp.ne.s32.totalorder %s1270_s5, %s1030_s13  ;;  %s54_s10 = int_to_ptr.vmem [resolvable:$true] %s53_s10 }
  0x26   :  { %p1034_p3 = scmp.lt.u32.totalorder %s1030_s13, %s1270_s5 }
  0x28   :  { %p1036_p4 = pnand %p1034_p3, %p1031_p2 }
  0x2a   :  { %1039 = shalt.err (!%p1036_p4)
}
  0x2b   :  { %s1040_s20 = scalar_lea.vmem %s54_s10, 2048  ;;  %p1045_p6 = scmp.lt.s32.totalorder %s54_s10, %s54_s10 }
  0x2c   :  { %p1041_p5 = scmp.ne.s32.totalorder %s54_s10, %s1040_s20  ;;  %p1046_p7 = scmp.lt.s32.totalorder %s1040_s20, %s1040_s20 }
  0x2e   :  { %p1047_p8 = por %p1046_p7, %p1045_p6 }
  0x30   :  { %p1048_p9 = pnand %p1047_p8, %p1041_p5 }
  0x32   :  { %1051 = shalt.err (!%p1048_p9)
}
  0x33   :  { %s1109_s2 = smov 64   ;;  %s1110_s30 = smov 4  }
  0x34   :  { %59 = dma.hbm_to_vmem [thread:$0]  %s1270_s5, 2048, %s54_s10, [#allocation6], %s1109_s2, %s1109_s2, %s1110_s30  }
  0x35   :  { %1096 = dma.done.wait [#allocation3], 2048  }
  0x36   :  { %1097 = vsyncadd [#allocation3], 4294965248 }
  0x37   :  { %1098 = dma.done.wait [#allocation6], 4096  }
  0x38   :  { %1099 = vsyncadd [#allocation6], 4294963200  ;;  %v1111_v0 = vmov 0   ;;  %v72_v1 = vld [vmem:[%s1265_s0] sm:$0xff]  ;;  %v916_v6 = vld [vmem:[#allocation5 + $0x14] ss:$8 sps:$4 sm:$0xff]  }
  0x39   :  { %909 = vset.pattern.permute.xlu0 %v1111_v0  ;;  %439 = vmatprep.mubr.bf16.mxu0 %v1111_v0  ;;  %v910_v2 = vld [vmem:[#allocation5 + $0x4] ss:$8 sps:$4 sm:$0xff]   ;;  %v914_v4 = vld [vmem:[#allocation5] ss:$8 sps:$4 sm:$0xff]   ;;  %v918_v7 = vld [vmem:[#allocation2 + $0x14] ss:$8 sps:$4 sm:$0xff]  }
  0x3a   :  { %560 = vmatprep.mubr.bf16.mxu1 %v1111_v0  ;;  %76 = vperm.xlu0 %909, %v72_v1   ;;  %v912_v3 = vld [vmem:[#allocation2 + $0x4] ss:$8 sps:$4 sm:$0xff]   ;;  %v915_v5 = vld [vmem:[#allocation2] ss:$8 sps:$4 sm:$0xff]   ;;  %v920_v8 = vld [vmem:[#allocation5 + $0x10] ss:$8 sps:$4 sm:$0xff]  }
  0x3b   :  { %407 = vmatprep.subr.bf16.mxu0 %v910_v2  ;;  %528 = vmatprep.subr.bf16.mxu1 %v912_v3  ;;  %v921_v9 = vld [vmem:[#allocation2 + $0x10] ss:$8 sps:$4 sm:$0xff]   ;;  %v922_v10 = vld [vmem:[#allocation5 + $0x24] ss:$8 sps:$4 sm:$0xff]   ;;  %v926_v12 = vld [vmem:[#allocation5 + $0x20] ss:$8 sps:$4 sm:$0xff]  }
  0x3c   :  { %408 = vmatpush1.bf16.msra.mxu0 %v914_v4  ;;  %529 = vmatpush1.bf16.msra.mxu1 %v915_v5  ;;  %v924_v11 = vld [vmem:[#allocation2 + $0x24] ss:$8 sps:$4 sm:$0xff]   ;;  %v927_v13 = vld [vmem:[#allocation2 + $0x20] ss:$8 sps:$4 sm:$0xff]   ;;  %v928_v14 = vld [vmem:[#allocation5 + $0x34] ss:$8 sps:$4 sm:$0xff]  }
  0x3d   :  { %409 = vmatprep.subr.bf16.mxu0 %v916_v6  ;;  %530 = vmatprep.subr.bf16.mxu1 %v918_v7  ;;  %v930_v15 = vld [vmem:[#allocation2 + $0x34] ss:$8 sps:$4 sm:$0xff]   ;;  %v932_v16 = vld [vmem:[#allocation5 + $0x30] ss:$8 sps:$4 sm:$0xff]   ;;  %v934_v18 = vld [vmem:[#allocation5 + $0x44] ss:$8 sps:$4 sm:$0xff]  }
  0x3e   :  { %v933_v17 = vld [vmem:[#allocation2 + $0x30] ss:$8 sps:$4 sm:$0xff]   ;;  %v936_v19 = vld [vmem:[#allocation2 + $0x44] ss:$8 sps:$4 sm:$0xff]   ;;  %v938_v20 = vld [vmem:[#allocation5 + $0x40] ss:$8 sps:$4 sm:$0xff]  }
  0x3f   :  { %v939_v21 = vld [vmem:[#allocation2 + $0x40] ss:$8 sps:$4 sm:$0xff]   ;;  %v940_v22 = vld [vmem:[#allocation5 + $0x54] ss:$8 sps:$4 sm:$0xff]   ;;  %v944_v24 = vld [vmem:[#allocation5 + $0x50] ss:$8 sps:$4 sm:$0xff]  }
  0x40   :  { %410 = vmatpush1.bf16.msra.mxu0 %v920_v8  ;;  %531 = vmatpush1.bf16.msra.mxu1 %v921_v9  ;;  %v942_v23 = vld [vmem:[#allocation2 + $0x54] ss:$8 sps:$4 sm:$0xff]   ;;  %v945_v25 = vld [vmem:[#allocation2 + $0x50] ss:$8 sps:$4 sm:$0xff]   ;;  %v946_v26 = vld [vmem:[#allocation5 + $0x64] ss:$8 sps:$4 sm:$0xff]  }
  0x41   :  { %411 = vmatprep.subr.bf16.mxu0 %v922_v10  ;;  %532 = vmatprep.subr.bf16.mxu1 %v924_v11  ;;  %v948_v27 = vld [vmem:[#allocation2 + $0x64] ss:$8 sps:$4 sm:$0xff]   ;;  %v950_v28 = vld [vmem:[#allocation5 + $0x60] ss:$8 sps:$4 sm:$0xff]   ;;  %v952_v30 = vld [vmem:[#allocation5 + $0x74] ss:$8 sps:$4 sm:$0xff]  }
  0x42   :  { %v951_v29 = vld [vmem:[#allocation2 + $0x60] ss:$8 sps:$4 sm:$0xff]   ;;  %v954_v31 = vld [vmem:[#allocation2 + $0x74] ss:$8 sps:$4 sm:$0xff]   ;;  %v956_v32 = vld [vmem:[#allocation5 + $0x70] ss:$8 sps:$4 sm:$0xff]  }
  0x43   :  { %v957_v33 = vld [vmem:[#allocation2 + $0x70] ss:$8 sps:$4 sm:$0xff]   ;;  %v807_v34 = vld [vmem:[%s1266_s1] ss:$0 sm:$0xff]  ;;  %v1112_v47 = vmov 683565275  }
  0x44   :  { %412 = vmatpush1.bf16.msra.mxu0 %v926_v12  ;;  %533 = vmatpush1.bf16.msra.mxu1 %v927_v13  ;;  %v1113_v49 = vmov 2475754826   ;;  %v1114_v52 = vmov 2131351028   ;;  %v1115_v55 = vmov 2102212464  }
  0x45   :  { %413 = vmatprep.subr.bf16.mxu0 %v928_v14  ;;  %534 = vmatprep.subr.bf16.mxu1 %v930_v15  ;;  %v1116_v58 = vmov 920167782   ;;  %v1117_v61 = vmov 1326507024  }
  0x48   :  { %414 = vmatpush1.bf16.msra.mxu0 %v932_v16  ;;  %535 = vmatpush1.bf16.msra.mxu1 %v933_v17 }
  0x49   :  { %415 = vmatprep.subr.bf16.mxu0 %v934_v18  ;;  %536 = vmatprep.subr.bf16.mxu1 %v936_v19 }
  0x4c   :  { %416 = vmatpush1.bf16.msra.mxu0 %v938_v20  ;;  %537 = vmatpush1.bf16.msra.mxu1 %v939_v21 }
  0x4d   :  { %417 = vmatprep.subr.bf16.mxu0 %v940_v22  ;;  %538 = vmatprep.subr.bf16.mxu1 %v942_v23 }
  0x50   :  { %418 = vmatpush1.bf16.msra.mxu0 %v944_v24  ;;  %539 = vmatpush1.bf16.msra.mxu1 %v945_v25 }
  0x51   :  { %419 = vmatprep.subr.bf16.mxu0 %v946_v26  ;;  %540 = vmatprep.subr.bf16.mxu1 %v948_v27 }
  0x54   :  { %420 = vmatpush1.bf16.msra.mxu0 %v950_v28  ;;  %541 = vmatpush1.bf16.msra.mxu1 %v951_v29 }
  0x55   :  { %421 = vmatprep.subr.bf16.mxu0 %v952_v30  ;;  %542 = vmatprep.subr.bf16.mxu1 %v954_v31 }
  0x58   :  { %422 = vmatpush1.bf16.msra.mxu0 %v956_v32  ;;  %543 = vmatpush1.bf16.msra.mxu1 %v957_v33 }
  0xb9   :  { %v77_v35 = vpop.permute.xlu0 %76 }
  0xba   :  { %v1214_v36 = vmul.f32 %v807_v34, %v77_v35 }
  0xbc   :  { %v89_v37 = vand.u32 2139095040, %v1214_v36  ;;  %v86_v41 = vand.u32 2147483647, %v1214_v36  ;;  %vm88_vm7 = vcmp.lt.s32.totalorder %v1214_v36, 0  ;;  %vm178_vm15 = vweird.f32 %v1214_v36 }
  0xbe   :  { %v90_v38 = vshrl.u32 %v89_v37, 23  ;;  %v93_v44 = vand.u32 8388607, %v86_v41  ;;  %vm87_vm8 = vcmp.le.f32.partialorder %v86_v41, 0.7853982 }
  0xc0   :  { %v808_v39 = vadd.s32 4294967169, %v90_v38  ;;  %v94_v63 = vor.u32 8388608, %v93_v44 }
  0xc2   :  { %v96_v40 = vadd.s32 1, %v808_v39  ;;  %v134_v13 = vshll.u32 %v94_v63, 8 }
  0xc4   :  { %vm97_vm0 = vcmp.gt.s32.totalorder %v96_v40, 0 }
  0xc5   :  { %v98_v42 = vsel %vm97_vm0, %v96_v40, 0 }
  0xc6   :  { %v100_v43 = vand.u32 31, %v98_v42  ;;  %v99_v46 = vshrl.u32 %v98_v42, 5 }
  0xc8   :  { %v101_v45 = vsub.s32 32, %v100_v43  ;;  %v103_v48 = vshll.u32 %v1112_v47, %v100_v43  ;;  %v106_v50 = vshll.u32 %v1113_v49, %v100_v43  ;;  %v109_v54 = vshll.u32 %v1114_v52, %v100_v43 }
  0xc9   :  { %v112_v57 = vshll.u32 %v1115_v55, %v100_v43  ;;  %v115_v60 = vshll.u32 %v1116_v58, %v100_v43  ;;  %vm118_vm1 = vcmp.lt.s32.totalorder %v99_v46, 1  ;;  %vm121_vm2 = vcmp.lt.s32.totalorder %v99_v46, 4 }
  0xca   :  { %v104_v51 = vshrl.u32 %v1113_v49, %v101_v45  ;;  %v107_v53 = vshrl.u32 %v1114_v52, %v101_v45  ;;  %v110_v56 = vshrl.u32 %v1115_v55, %v101_v45  ;;  %v113_v59 = vshrl.u32 %v1116_v58, %v101_v45 }
  0xcb   :  { %v116_v62 = vshrl.u32 %v1117_v61, %v101_v45  ;;  %v102_v8 = vshrl.u32 %v1112_v47, %v101_v45  ;;  %vm120_vm3 = vcmp.lt.s32.totalorder %v99_v46, 3  ;;  %vm119_vm4 = vcmp.lt.s32.totalorder %v99_v46, 2 }
  0xcc   :  { %v105_v0 = vor.u32 %v104_v51, %v103_v48  ;;  %v108_v1 = vor.u32 %v107_v53, %v106_v50  ;;  %v111_v2 = vor.u32 %v110_v56, %v109_v54  ;;  %v114_v3 = vor.u32 %v113_v59, %v112_v57 }
  0xcd   :  { %v117_v4 = vor.u32 %v116_v62, %v115_v60 }
  0xce   :  { %v123_v5 = vsel %vm121_vm2, %v111_v2, 2102212464  ;;  %v126_v6 = vsel %vm118_vm1, %v105_v0, %v108_v1  ;;  %v130_v7 = vsel %vm118_vm1, %v108_v1, %v111_v2  ;;  %v127_v9 = vsel %vm121_vm2, %v114_v3, 920167782 }
  0xcf   :  { %v131_v10 = vsel %vm121_vm2, %v117_v4, 1326507024  ;;  %v128_v11 = vsel %vm120_vm3, %v111_v2, %v127_v9  ;;  %v122_v14 = vsel %vm118_vm1, %v102_v8, %v105_v0  ;;  %v124_v15 = vsel %vm120_vm3, %v108_v1, %v123_v5  ;;  %v958_v8 = vld [vmem:[#allocation7 + $0x40] sm:$0xff]  }
  0xd0   :  { %v132_v12 = vsel %vm120_vm3, %v114_v3, %v131_v10  ;;  %v129_v16 = vsel %vm119_vm4, %v126_v6, %v128_v11  ;;  %v125_v22 = vsel %vm119_vm4, %v122_v14, %v124_v15  ;;  %v959_v9 = vld [vmem:[#allocation7] sm:$0xff]   ;;  %867 = vmatprep.subr.bf16.mxu0 %v958_v8  ;;  %v960_v10 = vld [vmem:[#allocation7 + $0x48] sm:$0xff]   ;;  %v965_v14 = vld [vmem:[#allocation7 + $0x18] sm:$0xff]  }
  0xd1   :  { %v133_v17 = vsel %vm119_vm4, %v130_v7, %v132_v12  ;;  %v1223_v20 = vmul.u32.u64.low %v134_v13, %v129_v16  ;;  %v1224_v21 = vmul.u32.u64.high %v134_v13, %v129_v16, %v1223_v20  ;;  %v141_v24 = vmul.u32 %v134_v13, %v125_v22  ;;  %v961_v11 = vld [vmem:[#allocation7 + $0x8] sm:$0xff]   ;;  %v962_v12 = vld [vmem:[#allocation7 + $0x50] sm:$0xff]   ;;  %v966_v15 = vld [vmem:[#allocation7 + $0x60] sm:$0xff]  }
  0xd2   :  { %v1220_v18 = vmul.u32.u64.low %v134_v13, %v133_v17  ;;  %v1221_v19 = vmul.u32.u64.high %v134_v13, %v133_v17, %v1220_v18  ;;  %v963_v13 = vld [vmem:[#allocation7 + $0x10] sm:$0xff]   ;;  %v967_v16 = vld [vmem:[#allocation7 + $0x20] sm:$0xff]   ;;  %v968_v17 = vld [vmem:[#allocation7 + $0x68] sm:$0xff]  }
  0xd3   :  { %v144_v23 = vadd.s32 1, %v1224_v21  ;;  %v969_v18 = vld [vmem:[#allocation7 + $0x28] sm:$0xff]   ;;  %v973_v22 = vld [vmem:[#allocation7 + $0x38] sm:$0xff]  }
  0xd4   :  { %vm143_vm5 = vc.u32 %v1221_v19, %v1223_v20  ;;  %v142_v37 = vadd.s32 %v1223_v20, %v1221_v19  ;;  %v970_v19 = vld [vmem:[#allocation7 + $0x70] sm:$0xff]  }
  0xd5   :  { %v145_v25 = vsel %vm143_vm5, %v144_v23, %v1224_v21  ;;  %v971_v20 = vld [vmem:[#allocation7 + $0x30] sm:$0xff]   ;;  %v972_v21 = vld [vmem:[#allocation7 + $0x78] sm:$0xff]   ;;  %v571_v23 = vlaneseq }
  0xd6   :  { %v146_v26 = vadd.s32 %v145_v25, %v141_v24 }
  0xd7   :  { %v572_v24 = vshrl.u32 %v571_v23, 7 }
  0xd8   :  { %v147_v27 = vadd.s32 536870912, %v146_v26 }
  0xd9   :  { %v573_v25 = vsub.s32 0, %v572_v24 }
  0xda   :  { %v148_v28 = vshrl.u32 %v147_v27, 30  ;;  %v577_v27 = vsub.s32 1, %v572_v24 }
  0xdc   :  { %v149_v29 = vshll.u32 %v148_v28, 30  ;;  %v172_v50 = vsub.s32 4, %v148_v28 }
  0xde   :  { %v150_v30 = vsub.s32 %v146_v26, %v149_v29  ;;  %v173_v53 = vsel %vm88_vm7, %v172_v50, %v148_v28  ;;  %v569_v26 = vld [vmem:[%s1269_s4] sm:$0x3]  ;;  %s1118_s4 = smov [#allocation8]  }
  0xdf   :  { %v175_v55 = vsel %vm87_vm8, 0, %v173_v53  ;;  %v574_v28 = vrot.slane %v569_v26, %v573_v25  ;;  %s783_s24 = sshll.u32 %s1118_s4, 4  ;;  %s784_s24 = int_to_ptr.vmem [resolvable:$true] %s783_s24 }
  0xe0   :  { %v152_v31 = vsub.s32 0, %v150_v30  ;;  %v179_v56 = vadd.s32 3, %v175_v55  ;;  %v284_v57 = vand.u32 3, %v175_v55  ;;  %s1052_s25 = scalar_lea.vmem %s784_s24, 256  ;;  %p1057_p11 = scmp.lt.s32.totalorder %s784_s24, %s784_s24 }
  0xe1   :  { %p1053_p10 = scmp.ne.s32.totalorder %s784_s24, %s1052_s25  ;;  %p1058_p12 = scmp.lt.s32.totalorder %s1052_s25, %s1052_s25 }
  0xe2   :  { %v809_v32 = vmin.u32 %v152_v31, %v150_v30  ;;  %v180_v58 = vand.u32 3, %v179_v56  ;;  %vm289_vm9 = vcmp.eq.s32.totalorder %v284_v57, 2  ;;  %vm286_vm11 = vcmp.eq.s32.totalorder %v284_v57, 0 }
  0xe3   :  { %vm285_vm13 = vcmp.lt.s32.totalorder %v284_v57, 2  ;;  %v578_v31 = vrot.slane %v569_v26, %v577_v27  ;;  %p1059_p13 = por %p1058_p12, %p1057_p11 }
  0xe4   :  { %v154_v33 = vclz %v809_v32  ;;  %vm185_vm10 = vcmp.eq.s32.totalorder %v180_v58, 2  ;;  %vm182_vm12 = vcmp.eq.s32.totalorder %v180_v58, 0  ;;  %vm181_vm14 = vcmp.lt.s32.totalorder %v180_v58, 2 }
  0xe5   :  { %p1060_p0 = pnand %p1059_p13, %p1053_p10 }
  0xe6   :  { %v810_v34 = vadd.s32 4294967294, %v154_v33 }
  0xe8   :  { %vm811_vm6 = vcmp.lt.s32.totalorder %v810_v34, 0 }
  0xe9   :  { %v157_v35 = vsel %vm811_vm6, 0, %v810_v34 }
  0xea   :  { %v158_v38 = vsub.s32 32, %v157_v35  ;;  %v162_v39 = vsub.s32 4294967266, %v157_v35  ;;  %v159_v40 = vshll.u32 %v150_v30, %v157_v35 }
  0xec   :  { %v160_v42 = vshrl.u32 %v142_v37, %v158_v38  ;;  %v163_v43 = vadd.s32 127, %v162_v39 }
  0xee   :  { %v161_v44 = vor.u32 %v160_v42, %v159_v40  ;;  %v164_v45 = vshll.u32 %v163_v43, 23 }
  0xf0   :  { %v165_v46 = vor.u32 4788187, %v164_v45  ;;  %v168_v48 = vcvt.s32.f32 %v161_v44 }
  0xf2   :  { %v166_v47 = vand.u32 2147483647, %v165_v46 }
  0xf4   :  { %v169_v49 = vmul.f32 %v168_v48, %v166_v47 }
  0xf6   :  { %v170_v51 = vxor.u32 2147483648, %v169_v49 }
  0xf8   :  { %v171_v52 = vsel %vm88_vm7, %v170_v51, %v169_v49 }
  0xf9   :  { %v174_v54 = vsel %vm87_vm8, %v1214_v36, %v171_v52  ;;  %v964_v36 = vld [vmem:[#allocation7 + $0x58] sm:$0xff]  }
  0xfa   :  { %974 = vcosq.f32 %v174_v54 }
  0xfb   :  { %976 = vsinq.f32 %v174_v54 }
 0x104   :  { %v975_v59 = vpop.eup %974 }
 0x105   :  { %v977_v60 = vpop.eup %976  ;;  %v186_v61 = vxor.u32 2147483648, %v975_v59 }
 0x106   :  { %v183_v62 = vxor.u32 2147483648, %v977_v60 }
 0x107   :  { %v291_v63 = vsel %vm289_vm9, %v186_v61, %v977_v60  ;;  %v187_v41 = vsel %vm185_vm10, %v186_v61, %v977_v60 }
 0x108   :  { %v288_v0 = vsel %vm286_vm11, %v975_v59, %v183_v62  ;;  %v184_v1 = vsel %vm182_vm12, %v975_v59, %v183_v62 }
 0x109   :  { %v292_v2 = vsel %vm285_vm13, %v288_v0, %v291_v63  ;;  %v188_v3 = vsel %vm181_vm14, %v184_v1, %v187_v41 }
 0x10a   :  { %v293_v4 = vsel %vm178_vm15, nan, %v292_v2  ;;  %v189_v5 = vsel %vm178_vm15, nan, %v188_v3 }
 0x10b   :  { %v294_v6 = vpack.c.bf16 %v293_v4, %v293_v4  ;;  %v190_v7 = vpack.c.bf16 %v189_v5, %v189_v5 }
 0x10d   :  { %440 = vmatmul.mubr.bf16.vlgmr.msra.gmra.mrb[0].mxu0 %v294_v6  ;;  %561 = vmatmul.mubr.bf16.vlgmr.msra.gmra.mrb[0].mxu1 %v190_v7 }
 0x10e   :  { %868 = vmatpush3.bf16.msra.mxu0 %v959_v9 }
 0x10f   :  { %869 = vmatprep.subr.bf16.mxu0 %v960_v10 }
 0x112   :  { %870 = vmatpush3.bf16.msra.mxu0 %v961_v11 }
 0x113   :  { %871 = vmatprep.subr.bf16.mxu0 %v962_v12 }
 0x116   :  { %872 = vmatpush3.bf16.msra.mxu0 %v963_v13 }
 0x117   :  { %873 = vmatprep.subr.bf16.mxu0 %v964_v36 }
 0x11a   :  { %874 = vmatpush3.bf16.msra.mxu0 %v965_v14 }
 0x11b   :  { %875 = vmatprep.subr.bf16.mxu0 %v966_v15 }
 0x11e   :  { %876 = vmatpush3.bf16.msra.mxu0 %v967_v16 }
 0x11f   :  { %877 = vmatprep.subr.bf16.mxu0 %v968_v17 }
 0x122   :  { %878 = vmatpush3.bf16.msra.mxu0 %v969_v18 }
 0x123   :  { %879 = vmatprep.subr.bf16.mxu0 %v970_v19 }
 0x126   :  { %880 = vmatpush3.bf16.msra.mxu0 %v971_v20 }
 0x127   :  { %881 = vmatprep.subr.bf16.mxu0 %v972_v21 }
 0x12a   :  { %882 = vmatpush3.bf16.msra.mxu0 %v973_v22 }
 0x1e0   :  { %v441_v29 = vpop.f32.mrb[0].mxu0  ;;  %v562_v30 = vpop.f32.mrb[0].mxu1 }
 0x1e1   :  { %v563_v32 = vadd.f32 %v562_v30, %v441_v29  ;;  %v443_v33 = vpop.f32.mrb[1].mxu0  ;;  %v564_v34 = vpop.f32.mrb[1].mxu1 }
 0x1e2   :  { %v565_v35 = vadd.f32 %v564_v34, %v443_v33  ;;  %v445_v37 = vpop.f32.mrb[2].mxu0  ;;  %v566_v38 = vpop.f32.mrb[2].mxu1 }
 0x1e3   :  { %v581_v39 = vadd.f32 %v574_v28, %v563_v32  ;;  %v446_v40 = vpop.f32.mrb[3].mxu0  ;;  %v567_v42 = vpop.f32.mrb[3].mxu1 }
 0x1e4   :  { %v582_v43 = vadd.f32 %v578_v31, %v565_v35 }
 0x1e5   :  { %v848_v44 = vmul.f32 -1.442695, %v581_v39 }
 0x1e6   :  { %v849_v45 = vmul.f32 -1.442695, %v582_v43 }
 0x1e7   :  { %978 = vpow2.f32 %v848_v44 }
 0x1e8   :  { %980 = vpow2.f32 %v849_v45 }
 0x1f1   :  { %v979_v46 = vpop.eup %978 }
 0x1f2   :  { %v981_v47 = vpop.eup %980  ;;  %v589_v48 = vadd.f32 1.0, %v979_v46 }
 0x1f3   :  { %v590_v49 = vadd.f32 1.0, %v981_v47 }
 0x1f4   :  { %982 = vrcp.f32 %v589_v48 }
 0x1f5   :  { %984 = vrcp.f32 %v590_v49 }
 0x1fe   :  { %v983_v50 = vpop.eup %982 }
 0x1ff   :  { %v985_v51 = vpop.eup %984  ;;  %v595_v52 = vmul.f32 %v983_v50, %v581_v39 }
 0x200   :  { %v596_v53 = vmul.f32 %v985_v51, %v582_v43 }
 0x201   :  { %597 = vst [vmem:[#allocation8] sm:$0xff] %v595_v52  ;;  %v599_v55 = vpack.c.bf16 %v595_v52, %v595_v52 }
 0x202   :  { %598 = vst [vmem:[#allocation8 + $0x8] sm:$0xff] %v596_v53  ;;  %v600_v54 = vpack.c.bf16 %v596_v53, %v596_v53 }
 0x204   :  { %768 = vmatprep.mubr.bf16.mxu0 %v600_v54 }
 0x205   :  { %769 = vmatmul.mubr.bf16.vlgmr.msra.gmra.mrb[4].mxu0 %v599_v55 }
 0x206   :  { %1063 = shalt.err (!%p1060_p0)
}
 0x207   :  { %s1064_s29 = scalar_lea.hbm %s1272_s7, 256 }
 0x208   :  { %p1065_p1 = scmp.ne.s32.totalorder %s1272_s7, %s1064_s29  ;;  %p1068_p2 = scmp.lt.u32.totalorder %s1064_s29, %s1272_s7 }
 0x20a   :  { %p1070_p3 = pnand %p1068_p2, %p1065_p1 }
 0x20c   :  { %1073 = shalt.err (!%p1070_p3)
}
 0x20d   :  { %786 = dma.vmem_to_hbm [thread:$0]  %s784_s24, 256, %s1272_s7, [#allocation4]   ;;  %v850_v57 = vld [vmem:[%s1271_s6] ss:$0 sm:$0xff] }
 0x20e   :  { %s1119_s15 = smov [#allocation9]  }
 0x20f   :  { %s793_s16 = sshll.u32 %s1119_s15, 4  ;;  %s794_s16 = int_to_ptr.vmem [resolvable:$true] %s793_s16 }
 0x210   :  { %s1074_s19 = scalar_lea.vmem %s794_s16, 128  ;;  %p1079_p5 = scmp.lt.s32.totalorder %s794_s16, %s794_s16 }
 0x211   :  { %p1075_p4 = scmp.ne.s32.totalorder %s794_s16, %s1074_s19  ;;  %p1080_p6 = scmp.lt.s32.totalorder %s1074_s19, %s1074_s19 }
 0x213   :  { %p1081_p7 = por %p1080_p6, %p1079_p5 }
 0x215   :  { %p1082_p8 = pnand %p1081_p7, %p1075_p4 }
 0x2d8   :  { %v883_v56 = vpop.f32.mrb[4].mxu0 }
 0x2d9   :  { %v884_v58 = vpop.f32.mrb[5].mxu0 }
 0x2da   :  { %v885_v59 = vadd.f32 %v884_v58, %v883_v56  ;;  %v886_v60 = vpop.f32.mrb[6].mxu0 }
 0x2db   :  { %v887_v61 = vpop.f32.mrb[7].mxu0 }
 0x2dc   :  { %v771_v62 = vadd.f32 %v885_v59, %v850_v57 }
 0x2de   :  { %776 = vst [vmem:[#allocation9] sm:$0xff] %v771_v62 }
 0x2df   :  { %1085 = shalt.err (!%p1082_p8)
}
 0x2e0   :  { %s1086_s6 = scalar_lea.hbm %s1273_s8, 128 }
 0x2e1   :  { %p1087_p9 = scmp.ne.s32.totalorder %s1273_s8, %s1086_s6  ;;  %p1090_p10 = scmp.lt.u32.totalorder %s1086_s6, %s1273_s8 }
 0x2e3   :  { %p1092_p11 = pnand %p1090_p10, %p1087_p9 }
 0x2e5   :  { %1095 = shalt.err (!%p1092_p11)
}
 0x2e6   :  { %796 = dma.vmem_to_hbm [thread:$0]  %s794_s16, 128, %s1273_s8, [#allocation10]  }
 0x2e7   :  { %1100 = dma.done.wait [#allocation4], 256  }
 0x2e8   :  { %1101 = vsyncadd [#allocation4], 4294967040 }
 0x2e9   :  { %1102 = dma.done.wait [#allocation10], 128  }
 0x2ea   :  { %1103 = vsyncadd [#allocation10], 4294967168 }
 0x2eb   :  { %803 = vsyncpa [#allocation3], 1 }
 0x2ec   :  { %804 = vsyncpa [#allocation6], 1 }
 0x2ed   :  { %805 = vsyncpa [#allocation4], 1 }
 0x2ee   :  { %806 = vsyncpa [#allocation10], 1 }

</bundles_post_ra>
